<compile_context>
chip_gen: v5e
topology: v5e:2x2
jax: 0.10.0
libtpu: 0.0.40
codegen_flags: <defaults>
</compile_context>

<pallas_src>
import functools

import jax
import jax.numpy as jnp
from jax.experimental import pallas as pl
from jax.experimental.pallas import tpu as pltpu


def _round_up(x, m):
    return ((x + m - 1) // m) * m


def _propagator_kernel(a_in_ref, a_out_ref, s_in_ref, s_out_ref, s_cur_ref,
                       w_ain_ref, w_aout_ref, w_rz_ref, w_t_ref, b_ref,
                       out_ref, *, d_pad, compute_dtype):
    f32 = jnp.float32
    cd = compute_dtype

    s_cur = s_cur_ref[...]                                    # f32, used for gating

    # Adjacency message passing (MXU).
    a_in = jnp.dot(a_in_ref[...], s_in_ref[...], preferred_element_type=f32)
    a_out = jnp.dot(a_out_ref[...], s_out_ref[...], preferred_element_type=f32)

    # Fused gate pre-activations: one wide dot per operand, bias broadcast once.
    pre = (jnp.dot(a_in.astype(cd), w_ain_ref[...], preferred_element_type=f32)
           + jnp.dot(a_out.astype(cd), w_aout_ref[...], preferred_element_type=f32)
           + b_ref[...])                                      # [rows, 3*d_pad]

    rz = pre[:, :2 * d_pad] + jnp.dot(s_cur.astype(cd), w_rz_ref[...],
                                      preferred_element_type=f32)
    r = jax.nn.sigmoid(rz[:, :d_pad])
    z = jax.nn.sigmoid(rz[:, d_pad:])

    h_pre = pre[:, 2 * d_pad:] + jnp.dot((r * s_cur).astype(cd), w_t_ref[...],
                                         preferred_element_type=f32)
    h_hat = jnp.tanh(h_pre)

    out_ref[...] = (1.0 - z) * s_cur + z * h_hat


def _pad2d(x, rows, cols, dtype):
    out = jnp.zeros((rows, cols), dtype)
    return out.at[:x.shape[0], :x.shape[1]].set(x.astype(dtype))


def _fuse_params(params, state_dim, d_pad, compute_dtype):
    """Fuse the three gate Linears into four padded, lane-aligned matrices.

    Input layout (x @ W convention): params["w_*"] is [3*state_dim, state_dim]
    (rows 0:d act on a_in, d:2d on a_out, 2d:3d on the third operand),
    params["b_*"] is [1, state_dim].
    """
    d = state_dim

    def blocks(name):
        w = params[name]
        return w[:d], w[d:2 * d], w[2 * d:]

    w1r, w2r, w3r = blocks("w_r")
    w1z, w2z, w3z = blocks("w_z")
    w1t, w2t, w3t = blocks("w_t")

    def place(gate_blocks):
        out = jnp.zeros((d_pad, len(gate_blocks) * d_pad), jnp.float32)
        for g, blk in enumerate(gate_blocks):
            out = out.at[:d, g * d_pad:g * d_pad + d].set(blk)
        return out.astype(compute_dtype)

    w_ain = place([w1r, w1z, w1t])     # acts on a_in     -> [r | z | t]
    w_aout = place([w2r, w2z, w2t])    # acts on a_out    -> [r | z | t]
    w_rz = place([w3r, w3z])           # acts on s_cur    -> [r | z]
    w_t = place([w3t])                 # acts on r*s_cur  -> [t]

    b = jnp.zeros((1, 3 * d_pad), jnp.float32)
    for g, name in enumerate(("b_r", "b_z", "b_t")):
        b = b.at[0, g * d_pad:g * d_pad + d].set(params[name].reshape(-1))
    return w_ain, w_aout, w_rz, w_t, b


def propagator_forward(state_in, state_out, state_cur, A, params,
                       *, compute_dtype=jnp.float32, row_tile=256):
    """One GGNN gated propagation step (matches the PyTorch Propogator.forward).

    state_* : [n_node, state_dim] float32
    A       : [n_node, 2*n_node] float32 (in-adjacency | out-adjacency)
    params  : dict(w_r, b_r, w_z, b_z, w_t, b_t); w_* are [3*state_dim, state_dim]
              (pre-transposed, x @ W layout), b_* are [1, state_dim].
    compute_dtype : dtype fed to the MXU (jnp.bfloat16 recommended on v6e/v7x);
              accumulation and gating stay float32.
    """
    n, d = state_cur.shape
    assert A.shape == (n, 2 * n)

    d_pad = _round_up(d, 128)      # lane-dense output + vreg-aligned gate slices
    n_pad = _round_up(n, 8)        # sublane alignment
    use_grid = n_pad > row_tile
    n_rows = _round_up(n_pad, row_tile) if use_grid else n_pad

    A_in = _pad2d(A[:, :n], n_rows, n_pad, compute_dtype)
    A_out = _pad2d(A[:, n:], n_rows, n_pad, compute_dtype)
    s_in = _pad2d(state_in, n_pad, d_pad, compute_dtype)
    s_out = _pad2d(state_out, n_pad, d_pad, compute_dtype)
    s_cur = _pad2d(state_cur, n_rows, d_pad, jnp.float32)    # gating stays f32

    w_ain, w_aout, w_rz, w_t, b = _fuse_params(params, d, d_pad, compute_dtype)

    kernel = functools.partial(_propagator_kernel, d_pad=d_pad,
                               compute_dtype=compute_dtype)
    out_shape = jax.ShapeDtypeStruct((n_rows, d_pad), jnp.float32)
    args = (A_in, A_out, s_in, s_out, s_cur, w_ain, w_aout, w_rz, w_t, b)

    if not use_grid:
        # Whole problem fits comfortably in VMEM: no grid, no per-step pipeline
        # bookkeeping, every operand is a resident full block.
        vmem = pl.BlockSpec(memory_space=pltpu.MemorySpace.VMEM)
        out = pl.pallas_call(
            kernel,
            out_shape=out_shape,
            in_specs=[vmem] * len(args),
            out_specs=vmem,
        )(*args)
    else:
        # Row-tile the node axis: A_in/A_out/state_cur/output stream per tile;
        # state_in/state_out and the fused weights stay resident (constant
        # index_map).  Single "parallel" grid axis -> megacore row sharding and
        # bounded VMEM footprint on v7x/v5e.
        grid = (n_rows // row_tile,)
        row_spec = lambda last: pl.BlockSpec((row_tile, last), lambda i: (i, 0))
        full_spec = lambda shape: pl.BlockSpec(shape, lambda i: (0, 0))
        out = pl.pallas_call(
            kernel,
            out_shape=out_shape,
            grid=grid,
            in_specs=[
                row_spec(n_pad),                  # A_in
                row_spec(n_pad),                  # A_out
                full_spec((n_pad, d_pad)),        # state_in (resident)
                full_spec((n_pad, d_pad)),        # state_out (resident)
                row_spec(d_pad),                  # state_cur
                full_spec((d_pad, 3 * d_pad)),    # fused W on a_in
                full_spec((d_pad, 3 * d_pad)),    # fused W on a_out
                full_spec((d_pad, 2 * d_pad)),    # fused W on s_cur (r,z)
                full_spec((d_pad, d_pad)),        # W on r*s_cur (t)
                full_spec((1, 3 * d_pad)),        # fused bias
            ],
            out_specs=row_spec(d_pad),
            compiler_params=pltpu.CompilerParams(
                dimension_semantics=("parallel",)),
        )(*args)

    # TODO(synk): if the caller iterates propagation steps, alias the state_cur
    # buffer via input_output_aliases to avoid an extra HBM round-trip per step.
    return out[:n, :d]


def _reference(state_in, state_out, state_cur, A, params):
    n = state_cur.shape[0]
    a_in = A[:, :n] @ state_in
    a_out = A[:, n:] @ state_out
    a = jnp.concatenate([a_in, a_out, state_cur], axis=1)
    r = jax.nn.sigmoid(a @ params["w_r"] + params["b_r"])
    z = jax.nn.sigmoid(a @ params["w_z"] + params["b_z"])
    joined = jnp.concatenate([a_in, a_out, r * state_cur], axis=1)
    h_hat = jnp.tanh(joined @ params["w_t"] + params["b_t"])
    return (1.0 - z) * state_cur + z * h_hat


def _init_linear(key, in_dim, out_dim):
    # Deterministic init mimicking nn.Linear defaults (uniform(-1/sqrt(in), 1/sqrt(in))).
    kw, kb = jax.random.split(key)
    bound = 1.0 / jnp.sqrt(float(in_dim))
    w_t = jax.random.uniform(kw, (in_dim, out_dim), jnp.float32, -bound, bound)
    b = jax.random.uniform(kb, (1, out_dim), jnp.float32, -bound, bound)
    return w_t, b


def _make_case(key, n_node, state_dim):
    ks = jax.random.split(key, 7)
    state_in = jax.random.normal(ks[0], (n_node, state_dim), jnp.float32)
    state_out = jax.random.normal(ks[1], (n_node, state_dim), jnp.float32)
    state_cur = jax.random.normal(ks[2], (n_node, state_dim), jnp.float32)
    A = jax.random.uniform(ks[3], (n_node, 2 * n_node), jnp.float32)
    w_r, b_r = _init_linear(ks[4], 3 * state_dim, state_dim)
    w_z, b_z = _init_linear(ks[5], 3 * state_dim, state_dim)
    w_t, b_t = _init_linear(ks[6], 3 * state_dim, state_dim)
    params = dict(w_r=w_r, b_r=b_r, w_z=w_z, b_z=b_z, w_t=w_t, b_t=b_t)
    return state_in, state_out, state_cur, A, params


if __name__ == "__main__":
    key = jax.random.PRNGKey(0)
    k1, k2 = jax.random.split(key)

    # Case 1: module-sized problem (n_node=8, state_dim=32) -> grid-less path.
    si, so, sc, A, params = _make_case(k1, n_node=8, state_dim=32)
    out = jax.block_until_ready(propagator_forward(si, so, sc, A, params))
    ref = _reference(si, so, sc, A, params)
    assert out.shape == (8, 32)
    assert jnp.allclose(out, ref, atol=1e-5, rtol=1e-5), "case1 mismatch vs reference"

    # Case 1b: bf16 MXU operands (v6e/v7x fast path), f32 accumulation/gating.
    out_bf16 = jax.block_until_ready(
        propagator_forward(si, so, sc, A, params, compute_dtype=jnp.bfloat16))
    assert jnp.allclose(out_bf16, ref, atol=5e-2, rtol=5e-2), "bf16 mismatch vs reference"

    # Case 2: larger graph -> row-tiled "parallel" grid path.
    si2, so2, sc2, A2, params2 = _make_case(k2, n_node=512, state_dim=64)
    out2 = jax.block_until_ready(propagator_forward(si2, so2, sc2, A2, params2))
    ref2 = _reference(si2, so2, sc2, A2, params2)
    assert out2.shape == (512, 64)
    assert jnp.allclose(out2, ref2, atol=1e-3, rtol=1e-3), "case2 mismatch vs reference"

    print("KERNEL_OK")
</pallas_src>

<mosaic_0001>
module attributes {stable_mosaic.version = 11 : i64} {
  func.func @_propagator_kernel(%arg0: memref<8x8xf32, #tpu.memory_space<vmem>>, %arg1: memref<8x8xf32, #tpu.memory_space<vmem>>, %arg2: memref<8x128xf32, #tpu.memory_space<vmem>>, %arg3: memref<8x128xf32, #tpu.memory_space<vmem>>, %arg4: memref<8x128xf32, #tpu.memory_space<vmem>>, %arg5: memref<128x384xf32, #tpu.memory_space<vmem>>, %arg6: memref<128x384xf32, #tpu.memory_space<vmem>>, %arg7: memref<128x256xf32, #tpu.memory_space<vmem>>, %arg8: memref<128x128xf32, #tpu.memory_space<vmem>>, %arg9: memref<1x384xf32, #tpu.memory_space<vmem>>, %arg10: memref<8x128xf32, #tpu.memory_space<vmem>>) attributes {dimension_semantics = [], scalar_prefetch = 0 : i64, scratch_operands = 0 : i64, tpu.core_type = #tpu.core_type<tc>} {
    %c0 = arith.constant 0 : index
    %c0_0 = arith.constant 0 : index
    %0 = vector.load %arg4[%c0, %c0_0] : memref<8x128xf32, #tpu.memory_space<vmem>>, vector<8x128xf32>
    %c0_1 = arith.constant 0 : index
    %c0_2 = arith.constant 0 : index
    %1 = vector.load %arg0[%c0_1, %c0_2] : memref<8x8xf32, #tpu.memory_space<vmem>>, vector<8x8xf32>
    %c0_3 = arith.constant 0 : index
    %c0_4 = arith.constant 0 : index
    %2 = vector.load %arg2[%c0_3, %c0_4] : memref<8x128xf32, #tpu.memory_space<vmem>>, vector<8x128xf32>
    %cst = arith.constant dense<0.000000e+00> : vector<8x128xf32>
    %3 = tpu.matmul %1, %2, %cst {dimension_numbers = #tpu.dot_dimension_numbers<[1], [0], [0], [1], [0, 0, 1, 1], [], []>} : vector<8x8xf32>, vector<8x128xf32>, vector<8x128xf32> -> vector<8x128xf32>
    %c0_5 = arith.constant 0 : index
    %c0_6 = arith.constant 0 : index
    %4 = vector.load %arg1[%c0_5, %c0_6] : memref<8x8xf32, #tpu.memory_space<vmem>>, vector<8x8xf32>
    %c0_7 = arith.constant 0 : index
    %c0_8 = arith.constant 0 : index
    %5 = vector.load %arg3[%c0_7, %c0_8] : memref<8x128xf32, #tpu.memory_space<vmem>>, vector<8x128xf32>
    %cst_9 = arith.constant dense<0.000000e+00> : vector<8x128xf32>
    %6 = tpu.matmul %4, %5, %cst_9 {dimension_numbers = #tpu.dot_dimension_numbers<[1], [0], [0], [1], [0, 0, 1, 1], [], []>} : vector<8x8xf32>, vector<8x128xf32>, vector<8x128xf32> -> vector<8x128xf32>
    %c0_10 = arith.constant 0 : index
    %c0_11 = arith.constant 0 : index
    %7 = vector.load %arg5[%c0_10, %c0_11] : memref<128x384xf32, #tpu.memory_space<vmem>>, vector<128x384xf32>
    %cst_12 = arith.constant dense<0.000000e+00> : vector<8x384xf32>
    %8 = tpu.matmul %3, %7, %cst_12 {dimension_numbers = #tpu.dot_dimension_numbers<[1], [0], [0], [1], [0, 0, 1, 1], [], []>} : vector<8x128xf32>, vector<128x384xf32>, vector<8x384xf32> -> vector<8x384xf32>
    %c0_13 = arith.constant 0 : index
    %c0_14 = arith.constant 0 : index
    %9 = vector.load %arg6[%c0_13, %c0_14] : memref<128x384xf32, #tpu.memory_space<vmem>>, vector<128x384xf32>
    %cst_15 = arith.constant dense<0.000000e+00> : vector<8x384xf32>
    %10 = tpu.matmul %6, %9, %cst_15 {dimension_numbers = #tpu.dot_dimension_numbers<[1], [0], [0], [1], [0, 0, 1, 1], [], []>} : vector<8x128xf32>, vector<128x384xf32>, vector<8x384xf32> -> vector<8x384xf32>
    %11 = arith.addf %8, %10 : vector<8x384xf32>
    %c0_16 = arith.constant 0 : index
    %c0_17 = arith.constant 0 : index
    %12 = vector.load %arg9[%c0_16, %c0_17] : memref<1x384xf32, #tpu.memory_space<vmem>>, vector<1x384xf32>
    %13 = vector.broadcast %12 : vector<1x384xf32> to vector<8x384xf32>
    %14 = arith.addf %11, %13 : vector<8x384xf32>
    %15 = vector.extract_strided_slice %14 {offsets = [0, 0], sizes = [8, 256], strides = [1, 1]} : vector<8x384xf32> to vector<8x256xf32>
    %c0_18 = arith.constant 0 : index
    %c0_19 = arith.constant 0 : index
    %16 = vector.load %arg7[%c0_18, %c0_19] : memref<128x256xf32, #tpu.memory_space<vmem>>, vector<128x256xf32>
    %cst_20 = arith.constant dense<0.000000e+00> : vector<8x256xf32>
    %17 = tpu.matmul %0, %16, %cst_20 {dimension_numbers = #tpu.dot_dimension_numbers<[1], [0], [0], [1], [0, 0, 1, 1], [], []>} : vector<8x128xf32>, vector<128x256xf32>, vector<8x256xf32> -> vector<8x256xf32>
    %18 = arith.addf %15, %17 : vector<8x256xf32>
    %19 = vector.extract_strided_slice %18 {offsets = [0, 0], sizes = [8, 128], strides = [1, 1]} : vector<8x256xf32> to vector<8x128xf32>
    %20 = arith.negf %19 : vector<8x128xf32>
    %21 = math.exp %20 : vector<8x128xf32>
    %cst_21 = arith.constant 1.000000e+00 : f32
    %22 = vector.broadcast %cst_21 : f32 to vector<8x128xf32>
    %23 = arith.addf %22, %21 : vector<8x128xf32>
    %24 = arith.divf %22, %23 : vector<8x128xf32>
    %25 = vector.extract_strided_slice %18 {offsets = [0, 128], sizes = [8, 128], strides = [1, 1]} : vector<8x256xf32> to vector<8x128xf32>
    %26 = arith.negf %25 : vector<8x128xf32>
    %27 = math.exp %26 : vector<8x128xf32>
    %cst_22 = arith.constant 1.000000e+00 : f32
    %28 = vector.broadcast %cst_22 : f32 to vector<8x128xf32>
    %29 = arith.addf %28, %27 : vector<8x128xf32>
    %30 = arith.divf %28, %29 : vector<8x128xf32>
    %31 = vector.extract_strided_slice %14 {offsets = [0, 256], sizes = [8, 128], strides = [1, 1]} : vector<8x384xf32> to vector<8x128xf32>
    %32 = arith.mulf %24, %0 : vector<8x128xf32>
    %c0_23 = arith.constant 0 : index
    %c0_24 = arith.constant 0 : index
    %33 = vector.load %arg8[%c0_23, %c0_24] : memref<128x128xf32, #tpu.memory_space<vmem>>, vector<128x128xf32>
    %cst_25 = arith.constant dense<0.000000e+00> : vector<8x128xf32>
    %34 = tpu.matmul %32, %33, %cst_25 {dimension_numbers = #tpu.dot_dimension_numbers<[1], [0], [0], [1], [0, 0, 1, 1], [], []>} : vector<8x128xf32>, vector<128x128xf32>, vector<8x128xf32> -> vector<8x128xf32>
    %35 = arith.addf %31, %34 : vector<8x128xf32>
    %36 = math.tanh %35 : vector<8x128xf32>
    %cst_26 = arith.constant 1.000000e+00 : f32
    %37 = vector.broadcast %cst_26 : f32 to vector<8x128xf32>
    %38 = arith.subf %37, %30 : vector<8x128xf32>
    %39 = arith.mulf %38, %0 : vector<8x128xf32>
    %40 = arith.mulf %30, %36 : vector<8x128xf32>
    %41 = arith.addf %39, %40 : vector<8x128xf32>
    %c0_27 = arith.constant 0 : index
    %c0_28 = arith.constant 0 : index
    %42 = vector.load %arg10[%c0_27, %c0_28] : memref<8x128xf32, #tpu.memory_space<vmem>>, vector<8x128xf32>
    tpu.vector_store %arg10[%c0_27, %c0_28], %41 {strides = array<i32>} : memref<8x128xf32, #tpu.memory_space<vmem>>, vector<8x128xf32>,
    return
  }
}

</mosaic_0001>

<bundles_post_ra>
// kernel: tpu_custom_call.1
= control target key start
LH: loop header
LB: loop body
LE: loop exit
PB: predicated region body
PF: predicated region fallthrough
CT: control target
= control target key end

     0   :  { %15 = vsyncpa [#allocation3], 0  ;;  %s1020_s0 = inlined_call_operand.hbm [shape: f32[8,8], index: 0, kind: input, shape index: {}]   ;;  %s1021_s1 = inlined_call_operand.hbm [shape: f32[8,8], index: 1, kind: input, shape index: {}]   ;;  %s1022_s2 = inlined_call_operand.hbm [shape: f32[8,128], index: 2, kind: input, shape index: {}]   ;;  %s1023_s3 = inlined_call_operand.hbm [shape: f32[8,128], index: 3, kind: input, shape index: {}]   ;;  %s1024_s4 = inlined_call_operand.hbm [shape: f32[8,128], index: 4, kind: input, shape index: {}]   ;;  %s1025_s5 = inlined_call_operand.hbm [shape: f32[128,384], index: 5, kind: input, shape index: {}]   ;;  %s1026_s6 = inlined_call_operand.hbm [shape: f32[128,384], index: 6, kind: input, shape index: {}]   ;;  %s1027_s7 = inlined_call_operand.hbm [shape: f32[128,256], index: 7, kind: input, shape index: {}]   ;;  %s1028_s8 = inlined_call_operand.hbm [shape: f32[128,128], index: 8, kind: input, shape index: {}]   ;;  %s1029_s9 = inlined_call_operand.vmem [shape: f32[1,384], index: 9, kind: input, shape index: {}]   ;;  %s1030_s10 = inlined_call_operand.hbm [shape: f32[8,128], index: 10, kind: output, shape index: {}]  }
   0x1   :  { %16 = vsyncpa [#allocation6], 0 }
   0x2   :  { %17 = vsyncpa [#allocation9], 0 }
   0x3   :  { %18 = vsyncpa [#allocation12], 0 }
   0x4   :  { %19 = vsyncpa [#allocation15], 0  ;;  %s37_s15 = sshll.u32 %s1021_s1, 4  ;;  %s38_s15 = int_to_ptr.hbm [resolvable:$true] %s37_s15 }
   0x5   :  { %20 = vsyncpa [#allocation4], 0  ;;  %s904_s16 = smov [#allocation5]   ;;  %s59_s20 = sshll.u32 %s1023_s3, 4  ;;  %s60_s20 = int_to_ptr.hbm [resolvable:$true] %s59_s20 }
   0x6   :  { %s39_s17 = sshll.u32 %s904_s16, 4  ;;  %s905_s21 = smov [#allocation8]   ;;  %s40_s17 = int_to_ptr.vmem [resolvable:$true] %s39_s17 }
   0x7   :  { %42 = dma.hbm_to_vmem [thread:$0]  %s38_s15, 128, %s40_s17, [#allocation6]  }
   0x8   :  { %s61_s22 = sshll.u32 %s905_s21, 4  ;;  %s80_s25 = sshll.u32 %s1025_s5, 4  ;;  %s62_s22 = int_to_ptr.vmem [resolvable:$true] %s61_s22  ;;  %s81_s25 = int_to_ptr.hbm [resolvable:$true] %s80_s25 }
   0x9   :  { %64 = dma.hbm_to_vmem [thread:$0]  %s60_s20, 128, %s62_s22, [#allocation9]  }
   0xa   :  { %s906_s1 = smov [#allocation11]   ;;  %s106_s29 = sshll.u32 %s1027_s7, 4  ;;  %s107_s29 = int_to_ptr.hbm [resolvable:$true] %s106_s29 }
   0xb   :  { %s82_s26 = sshll.u32 %s906_s1, 4  ;;  %s907_s30 = smov 384   ;;  %s83_s26 = int_to_ptr.vmem [resolvable:$true] %s82_s26 }
   0xc   :  { %s908_s3 = smov 24   ;;  %s909_s11 = smov [#allocation14]  }
   0xd   :  { %88 = dma.hbm_to_vmem [thread:$0]  %s81_s25, 6144, %s83_s26, [#allocation12], %s907_s30, %s907_s30, %s908_s3  }
   0xe   :  { %s108_s12 = sshll.u32 %s909_s11, 4  ;;  %s910_s5 = smov 256   ;;  %s109_s12 = int_to_ptr.vmem [resolvable:$true] %s108_s12 }
   0xf   :  { %s911_s13 = smov 16   ;;  %s26_s16 = sshll.u32 %s1020_s0, 4  ;;  %s27_s16 = int_to_ptr.hbm [resolvable:$true] %s26_s16 }
  0x10   :  { %114 = dma.hbm_to_vmem [thread:$0]  %s107_s29, 4096, %s109_s12, [#allocation15], %s910_s5, %s910_s5, %s911_s13  }
  0x11   :  { %s912_s17 = smov [#allocation2]   ;;  %s48_s20 = sshll.u32 %s1022_s2, 4  ;;  %s49_s20 = int_to_ptr.hbm [resolvable:$true] %s48_s20 }
  0x12   :  { %s28_s7 = sshll.u32 %s912_s17, 4  ;;  %s913_s21 = smov [#allocation7]   ;;  %s29_s7 = int_to_ptr.vmem [resolvable:$true] %s28_s7 }
  0x13   :  { %31 = dma.hbm_to_vmem [thread:$0]  %s27_s16, 128, %s29_s7, [#allocation3]  }
  0x14   :  { %s50_s22 = sshll.u32 %s913_s21, 4  ;;  %s70_s25 = sshll.u32 %s1024_s4, 4  ;;  %s51_s22 = int_to_ptr.vmem [resolvable:$true] %s50_s22  ;;  %s71_s25 = int_to_ptr.hbm [resolvable:$true] %s70_s25 }
  0x15   :  { %53 = dma.hbm_to_vmem [thread:$0]  %s49_s20, 128, %s51_s22, [#allocation6]  }
  0x16   :  { %s93_s26 = sshll.u32 %s1026_s6, 4  ;;  %s914_s27 = smov [#allocation10]   ;;  %s94_s26 = int_to_ptr.hbm [resolvable:$true] %s93_s26 }
  0x17   :  { %s72_s28 = sshll.u32 %s914_s27, 4  ;;  %s915_s2 = smov [#allocation13]   ;;  %s73_s28 = int_to_ptr.vmem [resolvable:$true] %s72_s28 }
  0x18   :  { %75 = dma.hbm_to_vmem [thread:$0]  %s71_s25, 128, %s73_s28, [#allocation9]  }
  0x19   :  { %s95_s29 = sshll.u32 %s915_s2, 4  ;;  %s119_s5 = sshll.u32 %s1028_s8, 4  ;;  %s96_s29 = int_to_ptr.vmem [resolvable:$true] %s95_s29  ;;  %s120_s5 = int_to_ptr.hbm [resolvable:$true] %s119_s5 }
  0x1a   :  { %101 = dma.hbm_to_vmem [thread:$0]  %s94_s26, 6144, %s96_s29, [#allocation12], %s907_s30, %s907_s30, %s908_s3  }
  0x1b   :  { %s916_s4 = smov [#allocation16]   ;;  %s917_s6 = smov 128  }
  0x1c   :  { %s121_s13 = sshll.u32 %s916_s4, 4  ;;  %s918_s14 = smov 8   ;;  %s122_s13 = int_to_ptr.vmem [resolvable:$true] %s121_s13 }
  0x1d   :  { %127 = dma.hbm_to_vmem [thread:$0]  %s120_s5, 2048, %s122_s13, [#allocation15], %s917_s6, %s917_s6, %s918_s14  }
  0x1e   :  { %892 = dma.done.wait [#allocation3], 128  }
  0x1f   :  { %893 = vsyncadd [#allocation3], 4294967168 }
  0x20   :  { %894 = dma.done.wait [#allocation6], 256  }
  0x21   :  { %895 = vsyncadd [#allocation6], 4294967040 }
  0x22   :  { %896 = dma.done.wait [#allocation9], 256  }
  0x23   :  { %897 = vsyncadd [#allocation9], 4294967040 }
  0x24   :  { %898 = dma.done.wait [#allocation12], 12288  }
  0x25   :  { %899 = vsyncadd [#allocation12], 4294955008 }
  0x26   :  { %900 = dma.done.wait [#allocation15], 6144  }
  0x27   :  { %901 = vsyncadd [#allocation15], 4294961152  ;;  %vm169_vm0 = vcmask 64512   ;;  %v194_v0 = vld [vmem:[#allocation8] sm:$0xff]  ;;  %v193_v1 = vld [vmem:[#allocation5] sm:$0xff]  ;;  %s608_s17 = sshll.u32 %s1030_s10, 4  ;;  %s609_s17 = int_to_ptr.hbm [resolvable:$true] %s608_s17 }
  0x28   :  { %v168_v2 = vld [vmem:[#allocation7] sm:$0xff]  ;;  %213 = vmatpush.msra.mxu1 %v194_v0  ;;  %v167_v3 = vld [vmem:[#allocation2] sm:$0xff]  ;;  %v312_v5 = vld [vmem:[#allocation13 + $0x170] sm:$0xff] }
  0x29   :  { %188 = vmatpush.msra.mxu0 %v168_v2  ;;  %v311_v4 = vld [vmem:[#allocation13 + $0x168] sm:$0xff]  ;;  %623 = vmatmul.msk.f32.vlgmr.msra.gmra.mxu1 %vm169_vm0, %v193_v1  ;;  %v308_v6 = vld [vmem:[#allocation13 + $0x150] sm:$0xff]  ;;  %v309_v7 = vld [vmem:[#allocation13 + $0x158] sm:$0xff] }
  0x2a   :  { %622 = vmatmul.msk.f32.vlgmr.msra.gmra.mxu0 %vm169_vm0, %v167_v3  ;;  %v313_v8 = vld [vmem:[#allocation13 + $0x178] sm:$0xff]  ;;  %314 = vmatpush.msra.mxu2 %v311_v4  ;;  %v310_v9 = vld [vmem:[#allocation13 + $0x160] sm:$0xff]  ;;  %v307_v12 = vld [vmem:[#allocation13 + $0x148] sm:$0xff] }
  0x2b   :  { %334 = vmatpush.msra.mxu3 %v312_v5  ;;  %354 = vmatpush.msrb.mxu0 %v313_v8  ;;  %v305_v10 = vld [vmem:[#allocation13 + $0x138] sm:$0xff]  ;;  %v306_v11 = vld [vmem:[#allocation13 + $0x140] sm:$0xff]  ;;  %v303_v14 = vld [vmem:[#allocation13 + $0x128] sm:$0xff] }
  0x2c   :  { %315 = vmatpush.msra.mxu2 %v308_v6  ;;  %v302_v13 = vld [vmem:[#allocation13 + $0x120] sm:$0xff]  ;;  %v304_v15 = vld [vmem:[#allocation13 + $0x130] sm:$0xff]  ;;  %v263_v16 = vld [vmem:[#allocation11 + $0x168] sm:$0xff] }
  0x2d   :  { %335 = vmatpush.msra.mxu3 %v309_v7  ;;  %355 = vmatpush.msrb.mxu0 %v310_v9  ;;  %v299_v17 = vld [vmem:[#allocation13 + $0x108] sm:$0xff]  ;;  %v300_v18 = vld [vmem:[#allocation13 + $0x110] sm:$0xff]  ;;  %v301_v20 = vld [vmem:[#allocation13 + $0x118] sm:$0xff] }
  0x2e   :  { %316 = vmatpush.msra.mxu2 %v305_v10  ;;  %374 = vmatpush.msrb.mxu1 %v263_v16  ;;  %v260_v19 = vld [vmem:[#allocation11 + $0x150] sm:$0xff]  ;;  %v257_v21 = vld [vmem:[#allocation11 + $0x138] sm:$0xff]  ;;  %v298_v24 = vld [vmem:[#allocation13 + $0x100] sm:$0xff] }
  0x2f   :  { %336 = vmatpush.msra.mxu3 %v306_v11  ;;  %356 = vmatpush.msrb.mxu0 %v307_v12  ;;  %v296_v22 = vld [vmem:[#allocation13 + $0xf0] sm:$0xff]  ;;  %v297_v23 = vld [vmem:[#allocation13 + $0xf8] sm:$0xff]  ;;  %v254_v25 = vld [vmem:[#allocation11 + $0x120] sm:$0xff] }
  0x30   :  { %317 = vmatpush.msra.mxu2 %v302_v13  ;;  %375 = vmatpush.msrb.mxu1 %v260_v19  ;;  %v293_v26 = vld [vmem:[#allocation13 + $0xd8] sm:$0xff]  ;;  %v294_v27 = vld [vmem:[#allocation13 + $0xe0] sm:$0xff]  ;;  %v295_v28 = vld [vmem:[#allocation13 + $0xe8] sm:$0xff] }
  0x31   :  { %337 = vmatpush.msra.mxu3 %v303_v14  ;;  %357 = vmatpush.msrb.mxu0 %v304_v15  ;;  %v251_v29 = vld [vmem:[#allocation11 + $0x108] sm:$0xff]  ;;  %v290_v30 = vld [vmem:[#allocation13 + $0xc0] sm:$0xff]  ;;  %v292_v32 = vld [vmem:[#allocation13 + $0xd0] sm:$0xff] }
  0x32   :  { %318 = vmatpush.msra.mxu2 %v299_v17  ;;  %376 = vmatpush.msrb.mxu1 %v257_v21  ;;  %v291_v31 = vld [vmem:[#allocation13 + $0xc8] sm:$0xff]  ;;  %v248_v33 = vld [vmem:[#allocation11 + $0xf0] sm:$0xff]  ;;  %v289_v36 = vld [vmem:[#allocation13 + $0xb8] sm:$0xff] }
  0x33   :  { %338 = vmatpush.msra.mxu3 %v300_v18  ;;  %358 = vmatpush.msrb.mxu0 %v301_v20  ;;  %v287_v34 = vld [vmem:[#allocation13 + $0xa8] sm:$0xff]  ;;  %v288_v35 = vld [vmem:[#allocation13 + $0xb0] sm:$0xff]  ;;  %v245_v37 = vld [vmem:[#allocation11 + $0xd8] sm:$0xff] }
  0x34   :  { %319 = vmatpush.msra.mxu2 %v296_v22  ;;  %377 = vmatpush.msrb.mxu1 %v254_v25  ;;  %v284_v38 = vld [vmem:[#allocation13 + $0x90] sm:$0xff]  ;;  %v285_v39 = vld [vmem:[#allocation13 + $0x98] sm:$0xff]  ;;  %v286_v40 = vld [vmem:[#allocation13 + $0xa0] sm:$0xff] }
  0x35   :  { %339 = vmatpush.msra.mxu3 %v297_v23  ;;  %359 = vmatpush.msrb.mxu0 %v298_v24  ;;  %v242_v41 = vld [vmem:[#allocation11 + $0xc0] sm:$0xff]  ;;  %v281_v42 = vld [vmem:[#allocation13 + $0x78] sm:$0xff]  ;;  %v283_v44 = vld [vmem:[#allocation13 + $0x88] sm:$0xff] }
  0x36   :  { %320 = vmatpush.msra.mxu2 %v293_v26  ;;  %378 = vmatpush.msrb.mxu1 %v251_v29  ;;  %v282_v43 = vld [vmem:[#allocation13 + $0x80] sm:$0xff]  ;;  %v239_v45 = vld [vmem:[#allocation11 + $0xa8] sm:$0xff]  ;;  %v280_v48 = vld [vmem:[#allocation13 + $0x70] sm:$0xff] }
  0x37   :  { %340 = vmatpush.msra.mxu3 %v294_v27  ;;  %360 = vmatpush.msrb.mxu0 %v295_v28  ;;  %v278_v46 = vld [vmem:[#allocation13 + $0x60] sm:$0xff]  ;;  %v279_v47 = vld [vmem:[#allocation13 + $0x68] sm:$0xff]  ;;  %v236_v49 = vld [vmem:[#allocation11 + $0x90] sm:$0xff] }
  0x38   :  { %321 = vmatpush.msra.mxu2 %v290_v30  ;;  %379 = vmatpush.msrb.mxu1 %v248_v33  ;;  %v275_v50 = vld [vmem:[#allocation13 + $0x48] sm:$0xff]  ;;  %v276_v51 = vld [vmem:[#allocation13 + $0x50] sm:$0xff]  ;;  %v277_v52 = vld [vmem:[#allocation13 + $0x58] sm:$0xff] }
  0x39   :  { %341 = vmatpush.msra.mxu3 %v291_v31  ;;  %361 = vmatpush.msrb.mxu0 %v292_v32  ;;  %v233_v53 = vld [vmem:[#allocation11 + $0x78] sm:$0xff]  ;;  %v272_v54 = vld [vmem:[#allocation13 + $0x30] sm:$0xff]  ;;  %v274_v56 = vld [vmem:[#allocation13 + $0x40] sm:$0xff] }
  0x3a   :  { %322 = vmatpush.msra.mxu2 %v287_v34  ;;  %380 = vmatpush.msrb.mxu1 %v245_v37  ;;  %v273_v55 = vld [vmem:[#allocation13 + $0x38] sm:$0xff]  ;;  %v230_v57 = vld [vmem:[#allocation11 + $0x60] sm:$0xff]  ;;  %v271_v60 = vld [vmem:[#allocation13 + $0x28] sm:$0xff] }
  0x3b   :  { %342 = vmatpush.msra.mxu3 %v288_v35  ;;  %362 = vmatpush.msrb.mxu0 %v289_v36  ;;  %v269_v58 = vld [vmem:[#allocation13 + $0x18] sm:$0xff]  ;;  %v270_v59 = vld [vmem:[#allocation13 + $0x20] sm:$0xff]  ;;  %v227_v61 = vld [vmem:[#allocation11 + $0x48] sm:$0xff] }
  0x3c   :  { %323 = vmatpush.msra.mxu2 %v284_v38  ;;  %381 = vmatpush.msrb.mxu1 %v242_v41  ;;  %v266_v62 = vld [vmem:[#allocation13] sm:$0xff]  ;;  %v267_v63 = vld [vmem:[#allocation13 + $0x8] sm:$0xff]  ;;  %v264_v0 = vld [vmem:[#allocation11 + $0x170] sm:$0xff] }
  0x3d   :  { %343 = vmatpush.msra.mxu3 %v285_v39  ;;  %363 = vmatpush.msrb.mxu0 %v286_v40  ;;  %v265_v1 = vld [vmem:[#allocation11 + $0x178] sm:$0xff]  ;;  %v268_v2 = vld [vmem:[#allocation13 + $0x10] sm:$0xff]  ;;  %v262_v5 = vld [vmem:[#allocation11 + $0x160] sm:$0xff] }
  0x3e   :  { %324 = vmatpush.msra.mxu2 %v281_v42  ;;  %382 = vmatpush.msrb.mxu1 %v239_v45  ;;  %v224_v3 = vld [vmem:[#allocation11 + $0x30] sm:$0xff]  ;;  %v261_v4 = vld [vmem:[#allocation11 + $0x158] sm:$0xff]  ;;  %v258_v8 = vld [vmem:[#allocation11 + $0x140] sm:$0xff] }
  0x3f   :  { %344 = vmatpush.msra.mxu3 %v282_v43  ;;  %364 = vmatpush.msrb.mxu0 %v283_v44  ;;  %v475_v6 = vld [vmem:[#allocation14 + $0xf0] sm:$0xff]  ;;  %v221_v7 = vld [vmem:[#allocation11 + $0x18] sm:$0xff]  ;;  %v259_v9 = vld [vmem:[#allocation11 + $0x148] sm:$0xff] }
  0x40   :  { %325 = vmatpush.msra.mxu2 %v278_v46  ;;  %383 = vmatpush.msrb.mxu1 %v236_v49  ;;  %v473_v10 = vld [vmem:[#allocation14 + $0xe0] sm:$0xff]  ;;  %v255_v12 = vld [vmem:[#allocation11 + $0x128] sm:$0xff]  ;;  %v256_v13 = vld [vmem:[#allocation11 + $0x130] sm:$0xff] }
  0x41   :  { %345 = vmatpush.msra.mxu3 %v279_v47  ;;  %365 = vmatpush.msrb.mxu0 %v280_v48  ;;  %v218_v11 = vld [vmem:[#allocation11] sm:$0xff]  ;;  %v471_v14 = vld [vmem:[#allocation14 + $0xd0] sm:$0xff]  ;;  %v476_v15 = vld [vmem:[#allocation14 + $0xf8] sm:$0xff] }
  0x42   :  { %326 = vmatpush.msra.mxu2 %v275_v50  ;;  %384 = vmatpush.msrb.mxu1 %v233_v53  ;;  %v252_v16 = vld [vmem:[#allocation11 + $0x110] sm:$0xff]  ;;  %v253_v17 = vld [vmem:[#allocation11 + $0x118] sm:$0xff]  ;;  %v469_v18 = vld [vmem:[#allocation14 + $0xc0] sm:$0xff] }
  0x43   :  { %346 = vmatpush.msra.mxu3 %v276_v51  ;;  %366 = vmatpush.msrb.mxu0 %v277_v52  ;;  %v474_v19 = vld [vmem:[#allocation14 + $0xe8] sm:$0xff]  ;;  %v249_v20 = vld [vmem:[#allocation11 + $0xf8] sm:$0xff]  ;;  %v250_v21 = vld [vmem:[#allocation11 + $0x100] sm:$0xff] }
  0x44   :  { %327 = vmatpush.msra.mxu2 %v272_v54  ;;  %385 = vmatpush.msrb.mxu1 %v230_v57  ;;  %v467_v22 = vld [vmem:[#allocation14 + $0xb0] sm:$0xff]  ;;  %v472_v23 = vld [vmem:[#allocation14 + $0xd8] sm:$0xff]  ;;  %v246_v24 = vld [vmem:[#allocation11 + $0xe0] sm:$0xff] }
  0x45   :  { %347 = vmatpush.msra.mxu3 %v273_v55  ;;  %367 = vmatpush.msrb.mxu0 %v274_v56  ;;  %v247_v25 = vld [vmem:[#allocation11 + $0xe8] sm:$0xff]  ;;  %v465_v26 = vld [vmem:[#allocation14 + $0xa0] sm:$0xff]  ;;  %v244_v29 = vld [vmem:[#allocation11 + $0xd0] sm:$0xff] }
  0x46   :  { %328 = vmatpush.msra.mxu2 %v269_v58  ;;  %386 = vmatpush.msrb.mxu1 %v227_v61  ;;  %v470_v27 = vld [vmem:[#allocation14 + $0xc8] sm:$0xff]  ;;  %v463_v30 = vld [vmem:[#allocation14 + $0x90] sm:$0xff]  ;;  %v468_v31 = vld [vmem:[#allocation14 + $0xb8] sm:$0xff] }
  0x47   :  { %348 = vmatpush.msra.mxu3 %v270_v59  ;;  %368 = vmatpush.msrb.mxu0 %v271_v60  ;;  %v243_v28 = vld [vmem:[#allocation11 + $0xc8] sm:$0xff]  ;;  %v240_v32 = vld [vmem:[#allocation11 + $0xb0] sm:$0xff]  ;;  %v241_v33 = vld [vmem:[#allocation11 + $0xb8] sm:$0xff] }
  0x48   :  { %329 = vmatpush.msra.mxu2 %v266_v62  ;;  %387 = vmatpush.msrb.mxu1 %v224_v3  ;;  %v461_v34 = vld [vmem:[#allocation14 + $0x80] sm:$0xff]  ;;  %v466_v35 = vld [vmem:[#allocation14 + $0xa8] sm:$0xff]  ;;  %v237_v36 = vld [vmem:[#allocation11 + $0x98] sm:$0xff] }
  0x49   :  { %349 = vmatpush.msra.mxu3 %v267_v63  ;;  %369 = vmatpush.msrb.mxu0 %v268_v2  ;;  %v238_v37 = vld [vmem:[#allocation11 + $0xa0] sm:$0xff]  ;;  %v459_v38 = vld [vmem:[#allocation14 + $0x70] sm:$0xff]  ;;  %v235_v40 = vld [vmem:[#allocation11 + $0x88] sm:$0xff] }
  0x4a   :  { %394 = vmatpush.msrb.mxu2 %v264_v0  ;;  %388 = vmatpush.msrb.mxu1 %v221_v7  ;;  %v234_v39 = vld [vmem:[#allocation11 + $0x80] sm:$0xff]  ;;  %v231_v42 = vld [vmem:[#allocation11 + $0x68] sm:$0xff]  ;;  %v232_v43 = vld [vmem:[#allocation11 + $0x70] sm:$0xff] }
  0x4b   :  { %414 = vmatpush.msrb.mxu3 %v265_v1  ;;  %477 = vmatpush.msra.mxu0 %v475_v6  ;;  %v457_v41 = vld [vmem:[#allocation14 + $0x60] sm:$0xff]  ;;  %v455_v44 = vld [vmem:[#allocation14 + $0x50] sm:$0xff]  ;;  %v464_v45 = vld [vmem:[#allocation14 + $0x98] sm:$0xff] }
  0x4c   :  { %395 = vmatpush.msrb.mxu2 %v261_v4  ;;  %389 = vmatpush.msrb.mxu1 %v218_v11  ;;  %v228_v46 = vld [vmem:[#allocation11 + $0x50] sm:$0xff]  ;;  %v229_v47 = vld [vmem:[#allocation11 + $0x58] sm:$0xff]  ;;  %v453_v48 = vld [vmem:[#allocation14 + $0x40] sm:$0xff] }
  0x4d   :  { %415 = vmatpush.msrb.mxu3 %v262_v5  ;;  %478 = vmatpush.msra.mxu0 %v473_v10  ;;  %v462_v49 = vld [vmem:[#allocation14 + $0x88] sm:$0xff]  ;;  %v225_v50 = vld [vmem:[#allocation11 + $0x38] sm:$0xff]  ;;  %v226_v51 = vld [vmem:[#allocation11 + $0x40] sm:$0xff] }
  0x4e   :  { %396 = vmatpush.msrb.mxu2 %v258_v8  ;;  %497 = vmatpush.msra.mxu1 %v476_v15  ;;  %v451_v52 = vld [vmem:[#allocation14 + $0x30] sm:$0xff]  ;;  %v460_v53 = vld [vmem:[#allocation14 + $0x78] sm:$0xff]  ;;  %v222_v54 = vld [vmem:[#allocation11 + $0x20] sm:$0xff] }
  0x4f   :  { %416 = vmatpush.msrb.mxu3 %v259_v9  ;;  %479 = vmatpush.msra.mxu0 %v471_v14  ;;  %v223_v55 = vld [vmem:[#allocation11 + $0x28] sm:$0xff]  ;;  %v449_v56 = vld [vmem:[#allocation14 + $0x20] sm:$0xff]  ;;  %v220_v59 = vld [vmem:[#allocation11 + $0x10] sm:$0xff] }
  0x50   :  { %397 = vmatpush.msrb.mxu2 %v255_v12  ;;  %498 = vmatpush.msra.mxu1 %v474_v19  ;;  %v458_v57 = vld [vmem:[#allocation14 + $0x68] sm:$0xff]  ;;  %v447_v60 = vld [vmem:[#allocation14 + $0x10] sm:$0xff]  ;;  %v456_v61 = vld [vmem:[#allocation14 + $0x58] sm:$0xff] }
  0x51   :  { %417 = vmatpush.msrb.mxu3 %v256_v13  ;;  %480 = vmatpush.msra.mxu0 %v469_v18  ;;  %v219_v58 = vld [vmem:[#allocation11 + $0x8] sm:$0xff]  ;;  %v445_v62 = vld [vmem:[#allocation14] sm:$0xff]  ;;  %v452_v0 = vld [vmem:[#allocation14 + $0x38] sm:$0xff] }
  0x52   :  { %398 = vmatpush.msrb.mxu2 %v252_v16  ;;  %499 = vmatpush.msra.mxu1 %v472_v23  ;;  %v454_v63 = vld [vmem:[#allocation14 + $0x48] sm:$0xff]  ;;  %v448_v2 = vld [vmem:[#allocation14 + $0x18] sm:$0xff]  ;;  %v572_v8 = vld [vmem:[#allocation16 + $0x70] sm:$0xff] }
  0x53   :  { %418 = vmatpush.msrb.mxu3 %v253_v17  ;;  %481 = vmatpush.msra.mxu0 %v467_v22  ;;  %v450_v1 = vld [vmem:[#allocation14 + $0x28] sm:$0xff]  ;;  %v1008_v6 = vld [vmem:[#allocation10] sm:$0xff]  ;;  %v570_v10 = vld [vmem:[#allocation16 + $0x60] sm:$0xff] }
  0x54   :  { %399 = vmatpush.msrb.mxu2 %v249_v20  ;;  %500 = vmatpush.msra.mxu1 %v470_v27  ;;  %v446_v3 = vld [vmem:[#allocation14 + $0x8] sm:$0xff]  ;;  %v573_v7 = vld [vmem:[#allocation16 + $0x78] sm:$0xff]  ;;  %v568_v12 = vld [vmem:[#allocation16 + $0x50] sm:$0xff] }
  0x55   :  { %419 = vmatpush.msrb.mxu3 %v250_v21  ;;  %482 = vmatpush.msra.mxu0 %v465_v26  ;;  %v571_v9 = vld [vmem:[#allocation16 + $0x68] sm:$0xff]  ;;  %v569_v11 = vld [vmem:[#allocation16 + $0x58] sm:$0xff]  ;;  %v566_v14 = vld [vmem:[#allocation16 + $0x40] sm:$0xff] }
  0x56   :  { %400 = vmatpush.msrb.mxu2 %v246_v24  ;;  %501 = vmatpush.msra.mxu1 %v468_v31  ;;  %v567_v13 = vld [vmem:[#allocation16 + $0x48] sm:$0xff]  ;;  %v565_v15 = vld [vmem:[#allocation16 + $0x38] sm:$0xff]  ;;  %v564_v16 = vld [vmem:[#allocation16 + $0x30] sm:$0xff] }
  0x57   :  { %420 = vmatpush.msrb.mxu3 %v247_v25  ;;  %483 = vmatpush.msra.mxu0 %v463_v30  ;;  %v563_v17 = vld [vmem:[#allocation16 + $0x28] sm:$0xff]  ;;  %v434_v19 = vld [vmem:[%s1029_s9] sm:$0x7]  ;;  %v562_v20 = vld [vmem:[#allocation16 + $0x20] sm:$0xff]  ;;  %s919_s9 = smov [#allocation17]  }
  0x58   :  { %401 = vmatpush.msrb.mxu2 %v243_v28  ;;  %502 = vmatpush.msra.mxu1 %v466_v35  ;;  %v561_v22 = vld [vmem:[#allocation16 + $0x18] sm:$0xff]  ;;  %v436_v23 = vperm.slane %v434_v19, 0  ;;  %v560_v26 = vld [vmem:[#allocation16 + $0x10] sm:$0xff]  ;;  %v559_v28 = vld [vmem:[#allocation16 + $0x8] sm:$0xff]  ;;  %s606_s3 = sshll.u32 %s919_s9, 4  ;;  %s607_s3 = int_to_ptr.vmem [resolvable:$true] %s606_s3 }
  0x59   :  { %421 = vmatpush.msrb.mxu3 %v244_v29  ;;  %484 = vmatpush.msra.mxu0 %v461_v34  ;;  %v558_v31 = vld [vmem:[#allocation16] sm:$0xff]  ;;  %v438_v34 = vperm.slane %v434_v19, 2 }
  0x5a   :  { %402 = vmatpush.msrb.mxu2 %v240_v32  ;;  %503 = vmatpush.msra.mxu1 %v464_v45 }
  0x5b   :  { %422 = vmatpush.msrb.mxu3 %v241_v33  ;;  %485 = vmatpush.msra.mxu0 %v459_v38 }
  0x5c   :  { %403 = vmatpush.msrb.mxu2 %v237_v36  ;;  %504 = vmatpush.msra.mxu1 %v462_v49 }
  0x5d   :  { %423 = vmatpush.msrb.mxu3 %v238_v37  ;;  %486 = vmatpush.msra.mxu0 %v457_v41 }
  0x5e   :  { %404 = vmatpush.msrb.mxu2 %v234_v39  ;;  %505 = vmatpush.msra.mxu1 %v460_v53  ;;  %v437_v53 = vperm.slane %v434_v19, 1 }
  0x5f   :  { %424 = vmatpush.msrb.mxu3 %v235_v40  ;;  %487 = vmatpush.msra.mxu0 %v455_v44 }
  0x60   :  { %405 = vmatpush.msrb.mxu2 %v231_v42  ;;  %506 = vmatpush.msra.mxu1 %v458_v57 }
  0x61   :  { %425 = vmatpush.msrb.mxu3 %v232_v43  ;;  %488 = vmatpush.msra.mxu0 %v453_v48 }
  0x62   :  { %406 = vmatpush.msrb.mxu2 %v228_v46  ;;  %507 = vmatpush.msra.mxu1 %v456_v61 }
  0x63   :  { %426 = vmatpush.msrb.mxu3 %v229_v47  ;;  %489 = vmatpush.msra.mxu0 %v451_v52 }
  0x64   :  { %407 = vmatpush.msrb.mxu2 %v225_v50  ;;  %508 = vmatpush.msra.mxu1 %v454_v63 }
  0x65   :  { %427 = vmatpush.msrb.mxu3 %v226_v51  ;;  %490 = vmatpush.msra.mxu0 %v449_v56 }
  0x66   :  { %408 = vmatpush.msrb.mxu2 %v222_v54  ;;  %509 = vmatpush.msra.mxu1 %v452_v0 }
  0x67   :  { %428 = vmatpush.msrb.mxu3 %v223_v55  ;;  %491 = vmatpush.msra.mxu0 %v447_v60 }
  0x68   :  { %409 = vmatpush.msrb.mxu2 %v219_v58  ;;  %510 = vmatpush.msra.mxu1 %v450_v1 }
  0x69   :  { %429 = vmatpush.msrb.mxu3 %v220_v59  ;;  %492 = vmatpush.msra.mxu0 %v445_v62 }
  0x6a   :  { %511 = vmatpush.msra.mxu1 %v448_v2 }
  0x6c   :  { %512 = vmatpush.msra.mxu1 %v446_v3 }
  0xa6   :  { %v215_v4 = vpop.f32.mrf.mxu1 }
  0xa7   :  { %v190_v5 = vpop.f32.mrf.mxu0  ;;  %330 = vmatmul.f32.vlgmr.msra.gmra.mxu2 %v215_v4  ;;  %350 = vmatmul.f32.vlgmr.msra.gmra.mxu3 %v215_v4 }
  0xa8   :  { %370 = vmatmul.f32.vlgmr.msrb.gmra.mxu0 %v215_v4  ;;  %390 = vmatmul.f32.vlgmr.msrb.gmra.mxu1 %v190_v5 }
  0xa9   :  { %574 = vmatpush.msra.mxu2 %v573_v7 }
  0xab   :  { %575 = vmatpush.msra.mxu2 %v572_v8 }
  0xad   :  { %576 = vmatpush.msra.mxu2 %v571_v9 }
  0xaf   :  { %410 = vmatmul.f32.vlgmr.msrb.gmra.mxu2 %v190_v5  ;;  %430 = vmatmul.f32.vlgmr.msrb.gmra.mxu3 %v190_v5 }
  0xb0   :  { %493 = vmatmul.f32.vlgmr.msra.gmra.mxu0 %v1008_v6  ;;  %513 = vmatmul.f32.vlgmr.msra.gmra.mxu1 %v1008_v6 }
  0xb1   :  { %577 = vmatpush.msra.mxu2 %v570_v10 }
  0xb3   :  { %578 = vmatpush.msra.mxu2 %v569_v11 }
  0xb5   :  { %579 = vmatpush.msra.mxu2 %v568_v12 }
  0xb7   :  { %580 = vmatpush.msra.mxu2 %v567_v13 }
  0xb9   :  { %581 = vmatpush.msra.mxu2 %v566_v14 }
  0xbb   :  { %582 = vmatpush.msra.mxu2 %v565_v15 }
  0xbd   :  { %583 = vmatpush.msra.mxu2 %v564_v16 }
  0xbf   :  { %584 = vmatpush.msra.mxu2 %v563_v17 }
  0xc1   :  { %585 = vmatpush.msra.mxu2 %v562_v20 }
  0xc3   :  { %586 = vmatpush.msra.mxu2 %v561_v22 }
  0xc5   :  { %587 = vmatpush.msra.mxu2 %v560_v26 }
  0xc7   :  { %588 = vmatpush.msra.mxu2 %v559_v28 }
  0xc9   :  { %589 = vmatpush.msra.mxu2 %v558_v31 }
 0x125   :  { %v371_v18 = vpop.f32.mrf.mxu0  ;;  %v391_v21 = vpop.f32.mrf.mxu1 }
 0x12a   :  { %v331_v24 = vpop.f32.mrf.mxu2  ;;  %v351_v25 = vpop.f32.mrf.mxu3 }
 0x12b   :  { %v392_v27 = vadd.f32 %v391_v21, %v331_v24 }
 0x12d   :  { %v442_v29 = vadd.f32 %v436_v23, %v392_v27  ;;  %v494_v30 = vpop.f32.mrf.mxu0  ;;  %v514_v55 = vpop.f32.mrf.mxu1 }
 0x12f   :  { %v517_v32 = vadd.f32 %v494_v30, %v442_v29 }
 0x131   :  { %v624_v33 = vmul.f32 -1.442695, %v517_v32 }
 0x132   :  { %v431_v35 = vpop.f32.mrf.mxu3  ;;  %v411_v51 = vpop.f32.mrf.mxu2 }
 0x133   :  { %642 = vpow2.f32 %v624_v33  ;;  %v432_v36 = vadd.f32 %v431_v35, %v371_v18  ;;  %v412_v52 = vadd.f32 %v411_v51, %v351_v25 }
 0x135   :  { %v444_v37 = vadd.f32 %v438_v34, %v432_v36  ;;  %v443_v54 = vadd.f32 %v437_v53, %v412_v52 }
 0x137   :  { %v518_v56 = vadd.f32 %v514_v55, %v443_v54 }
 0x139   :  { %v643_v38 = vpop.eup %642  ;;  %v625_v57 = vmul.f32 -1.442695, %v518_v56 }
 0x13a   :  { %v522_v39 = vadd.f32 1.0, %v643_v38 }
 0x13c   :  { %644 = vrcp.f32 %v522_v39  ;;  %v534_v43 = vand.u32 2147483648, %v522_v39  ;;  %v532_v45 = vand.u32 2147483647, %v522_v39  ;;  %vm528_vm2 = vweird.f32 %v522_v39 }
 0x13d   :  { %646 = vpow2.f32 %v625_v57 }
 0x13e   :  { %v535_v47 = vor.u32 1.1754944e-38, %v534_v43  ;;  %vm533_vm4 = vcmp.eq.f32.partialorder %v532_v45, 8.507059e+37 }
 0x142   :  { %v645_v40 = vpop.eup %644 }
 0x143   :  { %v524_v41 = vmul.f32 %v645_v40, %v522_v39  ;;  %vm529_vm1 = vweird.f32 %v645_v40  ;;  %v647_v58 = vpop.eup %646 }
 0x144   :  { %vm530_vm3 = vmor %vm528_vm2, %vm529_vm1  ;;  %v541_v59 = vadd.f32 1.0, %v647_v58 }
 0x145   :  { %v525_v42 = vsub.f32 1.0, %v524_v41 }
 0x146   :  { %648 = vrcp.f32 %v541_v59  ;;  %v553_v1 = vand.u32 2147483648, %v541_v59  ;;  %vm547_vm6 = vweird.f32 %v541_v59  ;;  %v551_v2 = vand.u32 2147483647, %v541_v59 }
 0x147   :  { %v526_v44 = vmul.f32 %v645_v40, %v525_v42 }
 0x148   :  { %v554_v7 = vor.u32 1.1754944e-38, %v553_v1  ;;  %vm552_vm8 = vcmp.eq.f32.partialorder %v551_v2, 8.507059e+37 }
 0x149   :  { %v527_v46 = vadd.f32 %v645_v40, %v526_v44 }
 0x14b   :  { %v531_v48 = vsel %vm530_vm3, %v645_v40, %v527_v46 }
 0x14c   :  { %v536_v49 = vsel %vm533_vm4, %v535_v47, %v531_v48  ;;  %v649_v60 = vpop.eup %648 }
 0x14d   :  { %v557_v50 = vmul.f32 %v536_v49, %v1008_v6  ;;  %v543_v61 = vmul.f32 %v649_v60, %v541_v59  ;;  %vm548_vm5 = vweird.f32 %v649_v60 }
 0x14e   :  { %vm549_vm7 = vmor %vm547_vm6, %vm548_vm5 }
 0x14f   :  { %590 = vmatmul.f32.vlgmr.msra.gmra.mxu2 %v557_v50  ;;  %v544_v62 = vsub.f32 1.0, %v543_v61 }
 0x151   :  { %v545_v63 = vmul.f32 %v649_v60, %v544_v62 }
 0x153   :  { %v546_v0 = vadd.f32 %v649_v60, %v545_v63 }
 0x155   :  { %v550_v4 = vsel %vm549_vm7, %v649_v60, %v546_v0 }
 0x156   :  { %v555_v8 = vsel %vm552_vm8, %v554_v7, %v550_v4 }
 0x157   :  { %v596_v9 = vsub.f32 1.0, %v555_v8 }
 0x159   :  { %v597_v11 = vmul.f32 %v596_v9, %v1008_v6 }
 0x1d2   :  { %v591_v3 = vpop.f32.mrf.mxu2 }
 0x1d3   :  { %v594_v5 = vadd.f32 %v591_v3, %v444_v37 }
 0x1d5   :  { %650 = vtanh.f32 %v594_v5 }
 0x1db   :  { %v651_v10 = vpop.eup %650 }
 0x1dc   :  { %v598_v12 = vmul.f32 %v651_v10, %v555_v8 }
 0x1de   :  { %v599_v13 = vadd.f32 %v598_v12, %v597_v11 }
 0x1e0   :  { %600 = vst [vmem:[#allocation17] sm:$0xff] %v599_v13 }
 0x1e1   :  { %611 = dma.vmem_to_hbm [thread:$0]  %s607_s3, 128, %s609_s17, [#allocation4]  }
 0x1e2   :  { %902 = dma.done.wait [#allocation4], 128  }
 0x1e3   :  { %903 = vsyncadd [#allocation4], 4294967168 }
 0x1e4   :  { %616 = vsyncpa [#allocation3], 1 }
 0x1e5   :  { %617 = vsyncpa [#allocation6], 1 }
 0x1e6   :  { %618 = vsyncpa [#allocation9], 1 }
 0x1e7   :  { %619 = vsyncpa [#allocation12], 1 }
 0x1e8   :  { %620 = vsyncpa [#allocation15], 1 }
 0x1e9   :  { %621 = vsyncpa [#allocation4], 1 }

</bundles_post_ra>
